<compile_context>
chip_gen: v5e
topology: v5e:2x2
jax: 0.10.0
libtpu: 0.0.40
codegen_flags: <defaults>
</compile_context>

<pallas_src>
import jax
import jax.numpy as jnp
from jax.experimental import pallas as pl
from jax.experimental.pallas import tpu as pltpu


def _make_dma_copy_kernel(row_bounds):
    """Build an HBM->HBM copy kernel.

    row_bounds: static tuple of (start, size) row ranges covering the whole
    output.  Each range gets its own DMA + semaphore; all DMAs are started
    first, then all are waited, so they run concurrently on the DMA engines.
    """

    def kernel(x_hbm, o_hbm, sem):
        copies = []
        for i, (r0, sz) in enumerate(row_bounds):
            cp = pltpu.make_async_copy(
                x_hbm.at[pl.ds(r0, sz)],
                o_hbm.at[pl.ds(r0, sz)],
                sem.at[i],
            )
            cp.start()
            copies.append(cp)
        for cp in copies:
            cp.wait()

    return kernel


def flatten(x, *, use_kernel=True, max_dma_chunks=4):
    """Pallas equivalent of Flatten.forward: (N, C, 1, 1) -> (N, C)."""
    assert x.ndim == 4, f"expected 4-D NCHW input, got {x.shape}"
    assert x.shape[2] == x.shape[3] == 1, f"{x.shape[2]} != {x.shape[3]} != 1"
    N, C = x.shape[0], x.shape[1]

    # Metadata-only: drop the trailing singleton spatial dims in the wrapper,
    # never inside the kernel.
    x2 = jnp.reshape(x, (N, C))

    if not use_kernel:
        # Fastest possible path: zero bytes moved.
        return x2

    itemsize = jnp.dtype(x.dtype).itemsize
    total = N * C

    # ---- choose a static chunking of rows for concurrent DMAs -------------
    # Aim for >= ~1 MiB per chunk; small arrays get a single DMA.
    bytes_total = total * itemsize
    n_chunks = max(1, min(max_dma_chunks, N, bytes_total // (1 << 20)))
    base, rem = divmod(N, n_chunks)
    row_bounds = []
    r = 0
    for i in range(n_chunks):
        sz = base + (1 if i < rem else 0)
        row_bounds.append((r, sz))
        r += sz
    assert r == N

    kernel = _make_dma_copy_kernel(tuple(row_bounds))

    return pl.pallas_call(
        kernel,
        out_shape=jax.ShapeDtypeStruct((N, C), x.dtype),
        # Raw HBM refs on both sides: no VMEM staging, no BlockSpec tiling.
        in_specs=[pl.BlockSpec(memory_space=pl.ANY)],
        out_specs=pl.BlockSpec(memory_space=pl.ANY),
        scratch_shapes=[pltpu.SemaphoreType.DMA((n_chunks,))],
        cost_estimate=pl.CostEstimate(
            flops=0,
            transcendentals=0,
            bytes_accessed=2 * bytes_total,  # pure data movement
        ),
    )(x2)


if __name__ == "__main__":
    key = jax.random.PRNGKey(0)
    k1, k2, k3 = jax.random.split(key, 3)

    # 1) Small shape implied by the module's assertion (spatial dims must be 1x1).
    N, C = 2, 4
    x = jax.random.normal(k1, (N, C, 1, 1), dtype=jnp.float32)
    out = jax.block_until_ready(flatten(x))
    ref = x[:, :, 0, 0]
    assert out.shape == (N, C), out.shape
    assert out.dtype == x.dtype
    assert jnp.array_equal(out, ref), "mismatch vs reference (small case)"

    # 2) Larger case that exercises the multi-chunk DMA path (>1 MiB per chunk).
    N2, C2 = 2048, 256  # 2 MiB f32 -> 2 DMA chunks
    x2 = jax.random.normal(k2, (N2, C2, 1, 1), dtype=jnp.float32)
    out2 = jax.block_until_ready(flatten(x2))
    assert jnp.array_equal(out2, x2[:, :, 0, 0]), "mismatch vs reference (chunked case)"

    # 3) Odd, non-128-aligned C and a sub-32-bit dtype (no layout constraints
    #    on the DMA path, so this needs no repacking).
    N3, C3 = 20, 96
    x3 = jax.random.normal(k3, (N3, C3, 1, 1), dtype=jnp.bfloat16)
    out3 = jax.block_until_ready(flatten(x3))
    assert out3.dtype == jnp.bfloat16
    assert jnp.array_equal(out3, x3[:, :, 0, 0]), "mismatch vs reference (odd-C bf16 case)"

    # 4) Pure-reshape fast path (zero bytes moved) agrees bit-exactly.
    out4 = jax.block_until_ready(flatten(x, use_kernel=False))
    assert jnp.array_equal(out4, ref), "mismatch vs reference (reshape path)"

    print("KERNEL_OK")
</pallas_src>

<mosaic_0001>
module attributes {stable_mosaic.version = 11 : i64} {
  func.func @kernel(%arg0: memref<2x4xf32, #tpu.memory_space<any>>, %arg1: memref<2x4xf32, #tpu.memory_space<any>>, %arg2: memref<1x!tpu.dma_semaphore, #tpu.memory_space<semaphore_mem>>) attributes {dimension_semantics = [], scalar_prefetch = 0 : i64, scratch_operands = 1 : i64, tpu.core_type = #tpu.core_type<tc>} {
    %c0_i32 = arith.constant 0 : i32
    %c0_i32_0 = arith.constant 0 : i32
    %c0_i32_1 = arith.constant 0 : i32
    %0 = tpu.memref_slice %arg0[%c0_i32_0, %c0_i32_1] : memref<2x4xf32, #tpu.memory_space<any>> -> memref<2x4xf32, #tpu.memory_space<any>>
    %c0_i32_2 = arith.constant 0 : i32
    %c0_i32_3 = arith.constant 0 : i32
    %1 = tpu.memref_slice %arg1[%c0_i32_2, %c0_i32_3] : memref<2x4xf32, #tpu.memory_space<any>> -> memref<2x4xf32, #tpu.memory_space<any>>
    %2 = tpu.memref_slice %arg2[%c0_i32] : memref<1x!tpu.dma_semaphore, #tpu.memory_space<semaphore_mem>> -> memref<1x!tpu.dma_semaphore, #tpu.memory_space<semaphore_mem>>
    %3 = tpu.memref_squeeze %2 : memref<1x!tpu.dma_semaphore, #tpu.memory_space<semaphore_mem>> -> memref<!tpu.dma_semaphore, #tpu.memory_space<semaphore_mem>>
    tpu.enqueue_dma source(%0 : memref<2x4xf32, #tpu.memory_space<any>>) target(%1 : memref<2x4xf32, #tpu.memory_space<any>>) target_semaphore(%3 : memref<!tpu.dma_semaphore, #tpu.memory_space<semaphore_mem>>)
    %c0_i32_4 = arith.constant 0 : i32
    %c0_i32_5 = arith.constant 0 : i32
    %c0_i32_6 = arith.constant 0 : i32
    %4 = tpu.memref_slice %arg0[%c0_i32_5, %c0_i32_6] : memref<2x4xf32, #tpu.memory_space<any>> -> memref<2x4xf32, #tpu.memory_space<any>>
    %c0_i32_7 = arith.constant 0 : i32
    %c0_i32_8 = arith.constant 0 : i32
    %5 = tpu.memref_slice %arg1[%c0_i32_7, %c0_i32_8] : memref<2x4xf32, #tpu.memory_space<any>> -> memref<2x4xf32, #tpu.memory_space<any>>
    %6 = tpu.memref_slice %arg2[%c0_i32_4] : memref<1x!tpu.dma_semaphore, #tpu.memory_space<semaphore_mem>> -> memref<1x!tpu.dma_semaphore, #tpu.memory_space<semaphore_mem>>
    %7 = tpu.memref_squeeze %6 : memref<1x!tpu.dma_semaphore, #tpu.memory_space<semaphore_mem>> -> memref<!tpu.dma_semaphore, #tpu.memory_space<semaphore_mem>>
    tpu.wait_dma2 semaphore(%7 : memref<!tpu.dma_semaphore, #tpu.memory_space<semaphore_mem>>) src(%4 : memref<2x4xf32, #tpu.memory_space<any>>) dst(%5 : memref<2x4xf32, #tpu.memory_space<any>>)
    return
  }
}

</mosaic_0001>

<bundles_post_ra>
// kernel: tpu_custom_call.1
= control target key start
LH: loop header
LB: loop body
LE: loop exit
PB: predicated region body
PF: predicated region fallthrough
CT: control target
= control target key end

     0   :  { %s32_s12 = smov [#allocation2]   ;;  %s33_s13 = smov [#allocation3]   ;;  %s51_s0 = inlined_call_operand.hbm [shape: f32[2,4], index: 0, kind: input, shape index: {}]   ;;  %s52_s1 = inlined_call_operand.hbm [shape: f32[2,4], index: 1, kind: output, shape index: {}]  }
   0x1   :  { %s10_s8 = sshll.u32 %s51_s0, 4  ;;  %s12_s11 = sshll.u32 %s52_s1, 4  ;;  %s11_s8 = int_to_ptr.hbm [resolvable:$true] %s10_s8  ;;  %s13_s11 = int_to_ptr.hbm [resolvable:$true] %s12_s11 }
   0x2   :  { %s34_s14 = smov 0  }
   0x3   :  { %16 = dma.general %s11_s8, 32, %s13_s11, %s32_s12, %s33_s13, [#allocation4], %s34_s14, 0  }
   0x4   :  { %30 = dma.done.wait [#allocation2], 32 }
   0x5   :  { %31 = vsyncadd [#allocation2], 4294967264 }
   0x6   :  { %20 = vsyncmov [#allocation2] }
   0x9   :  { %s21_s15 = vpop.sfrf %20 }
   0xa   :  { %p26_p0 = scmp.ne.s32.totalorder %s21_s15, 0 }
   0xc   :  { %25 = shalt.err (%p26_p0)  }

</bundles_post_ra>
